<compile_context>
chip_gen: v7x
topology: tpu7x:2x2x1
jax: 0.10.0
libtpu: 0.0.40
codegen_flags: <defaults>
</compile_context>

<pallas_src>
import functools

import jax
import jax.numpy as jnp
from jax import lax
from jax.experimental import pallas as pl
from jax.experimental.pallas import tpu as pltpu

_MIB = 1024 * 1024
# exp(s - 1/T) with s in [-1/T, 1/T] needs exp(-2/T) to stay inside f32 range
# (underflow near exp(-87)); below this temperature use the online-max path.
_FIXED_SHIFT_MIN_TEMPERATURE = 0.03


def _round_up(x, m):
    return -(-x // m) * m


# --------------------------------------------------------------------------- #
# Kernel
# --------------------------------------------------------------------------- #
def _predann_loss_kernel(z_q_ref, z_k_ref, out_ref,
                         qhat_ref, l_ref, m_ref, pos_ref, *,
                         inv_temperature, n_valid, n_total, key_tile,
                         use_fixed_shift, has_padding):
    c = pl.program_id(1)

    inv_t = jnp.float32(inv_temperature)
    # NOTE: torch.nn.CosineSimilarity clamps the *pair* denominator at 1e-8; we
    # clamp per-row squared norms instead (identical for non-degenerate rows).
    eps_sq = jnp.float32(1e-16)

    def _row_normalize(x_f32):
        sq = jnp.sum(x_f32 * x_f32, axis=-1, keepdims=True)
        return x_f32 * lax.rsqrt(jnp.maximum(sq, eps_sq))

    @pl.when(c == 0)
    def _init():
        # One-time (per parallel slice) work: normalize ALL query rows, fold
        # 1/temperature into their scale, cast to the MXU operand dtype.
        q = z_q_ref[0].astype(jnp.float32)
        qhat_ref[...] = (_row_normalize(q) * inv_t).astype(qhat_ref.dtype)
        l_ref[...] = jnp.zeros(l_ref.shape, jnp.float32)
        pos_ref[...] = jnp.zeros(pos_ref.shape, jnp.float32)
        if not use_fixed_shift:
            m_ref[...] = jnp.full(m_ref.shape, -jnp.inf, jnp.float32)

    # Current key tile, normalized (keep an f32 copy for the positive term).
    zk = z_k_ref[0].astype(jnp.float32)
    k_hat_f = _row_normalize(zk)                          # (TN, D) f32
    k_hat = k_hat_f.astype(qhat_ref.dtype)                # MXU operand dtype

    # Scores for this tile: s[r, k] = cos(q[r], key[c*TN + k]) / T.
    # Contract the shared last dim (no transposed operand materialized here).
    s = lax.dot_general(qhat_ref[...], k_hat,
                        dimension_numbers=(((1,), (1,)), ((), ())),
                        preferred_element_type=jnp.float32)   # (B_pad, TN) f32

    if has_padding:
        col = c * key_tile + lax.broadcasted_iota(jnp.int32, s.shape, 1)
        col_ok = col < n_valid

    if use_fixed_shift:
        # |s| <= 1/T, so a constant shift gives an exact logsumexp with a
        # single exp pass per tile: no running max, no per-step max reduction.
        e = jnp.exp(s - inv_t)
        if has_padding:
            e = jnp.where(col_ok, e, 0.0)
        l_ref[...] += jnp.sum(e, axis=-1, keepdims=True)
    else:
        # Tiny temperatures: flash-style online logsumexp (avoids underflow).
        if has_padding:
            s = jnp.where(col_ok, s, -jnp.inf)
        m_prev = m_ref[...]
        m_new = jnp.maximum(m_prev, jnp.max(s, axis=-1, keepdims=True))
        l_ref[...] = l_ref[...] * jnp.exp(m_prev - m_new) + \
            jnp.sum(jnp.exp(s - m_new), axis=-1, keepdims=True)
        m_ref[...] = m_new

    # Positive (diagonal / trace) contribution of this tile, taken from the
    # already normalized & 1/T-scaled query scratch rows aligned with the tile.
    row0 = pl.multiple_of(c * key_tile, key_tile)
    q_diag = qhat_ref[pl.ds(row0, key_tile), :].astype(jnp.float32)   # (TN, D)
    pos_tile = jnp.sum(jnp.sum(q_diag * k_hat_f, axis=-1, keepdims=True),
                       axis=0, keepdims=True)                          # (1, 1)
    pos_ref[...] += pos_tile

    @pl.when(c == pl.num_programs(1) - 1)
    def _finalize():
        if use_fixed_shift:
            row_lse = inv_t + jnp.log(l_ref[...])            # (B_pad, 1)
        else:
            row_lse = m_ref[...] + jnp.log(l_ref[...])
        if has_padding:
            rid = lax.broadcasted_iota(jnp.int32, row_lse.shape, 0)
            row_lse = jnp.where(rid < n_valid, row_lse, 0.0)
        total = jnp.sum(row_lse, axis=0, keepdims=True) - pos_ref[...]  # (1, 1)
        out_ref[...] = (total * jnp.float32(1.0 / n_total)).reshape(out_ref.shape)


# --------------------------------------------------------------------------- #
# Tiling / VMEM budgeting
# --------------------------------------------------------------------------- #
def _vmem_capacity_bytes():
    """Physical VMEM capacity; conservative 64 MiB fallback (v7x per-core)."""
    try:
        info = pltpu.get_tpu_info()
        for attr in ("vmem_capacity_bytes", "vmem_bytes", "vmem_size_bytes"):
            val = getattr(info, attr, None)
            if val:
                return int(val)
    except Exception:
        pass
    return 64 * _MIB


def _vmem_estimate_bytes(b_pad, d, key_tile, in_bytes, mm_bytes):
    query_in = 2 * b_pad * d * in_bytes       # resident query block (2 buffers)
    key_in = 2 * key_tile * d * in_bytes      # streamed key tile (2 buffers)
    qhat = b_pad * d * mm_bytes               # normalized-query scratch
    scores = 3 * b_pad * key_tile * 4         # s + exp/select temporaries (f32)
    norm_tmp = b_pad * d * 4                  # one-time f32 normalization temp
    vectors = 4 * b_pad * 4                   # row-LSE state
    return query_in + key_in + qhat + scores + norm_tmp + vectors


def _pick_tiling(batch, d, in_bytes, mm_bytes, budget):
    """Largest MXU-friendly key tile fitting the VMEM budget, preferring a tile
    that does not force extra zero padding of the batch beyond 128-alignment."""
    b128 = _round_up(batch, 128)
    best = None
    for key_tile in (512, 256, 128):
        if key_tile > b128:
            continue
        b_pad = _round_up(batch, key_tile)
        if _vmem_estimate_bytes(b_pad, d, key_tile, in_bytes, mm_bytes) > budget:
            continue
        cand_key = (b_pad > b128, -key_tile)   # no-extra-padding first, then size
        if best is None or cand_key < best[0]:
            best = (cand_key, key_tile, b_pad)
    if best is None:
        # TODO(synk): also tile the query dimension for batches so large that
        # even a 128-wide key tile overflows the per-core VMEM budget.
        return 128, b128
    return best[1], best[2]


# --------------------------------------------------------------------------- #
# Wrapper
# --------------------------------------------------------------------------- #
def predann_loss(z_i, z_j, *, temperature, detach=True, world_size=1,
                 matmul_dtype=None):
    """Forward pass of PredANN_Loss (NT-Xent). Returns a scalar float32 loss."""
    if world_size != 1:
        raise NotImplementedError(
            "world_size > 1 is not supported (matches the PyTorch module).")
    # TODO(synk): `detach` only changes gradient flow (z_j detached in the
    # positive term); the forward value is identical. A custom_vjp would be
    # needed for gradient parity with the PyTorch module.
    del detach

    assert z_i.shape == z_j.shape and z_i.ndim == 2
    B, D = z_i.shape
    n_total = 2 * B

    if matmul_dtype is None:
        # f32 matmuls run the MXU in multi-pass mode; bf16 operands with f32
        # accumulation keep the bounded cosine scores accurate enough for this
        # loss while greatly raising MXU throughput (biggest win on v5e).
        matmul_dtype = jnp.bfloat16 if z_i.dtype == jnp.float32 else z_i.dtype
    matmul_dtype = jnp.dtype(matmul_dtype)

    in_bytes = jnp.dtype(z_i.dtype).itemsize
    mm_bytes = matmul_dtype.itemsize

    vmem_cap = _vmem_capacity_bytes()
    key_tile, b_pad = _pick_tiling(B, D, in_bytes, mm_bytes,
                                   budget=int(vmem_cap * 0.6))
    vmem_limit = int(min(max(4 * _vmem_estimate_bytes(b_pad, D, key_tile,
                                                      in_bytes, mm_bytes),
                             32 * _MIB),
                         0.9 * vmem_cap))

    if b_pad != B:
        pad = b_pad - B
        z_i = jnp.pad(z_i, ((0, pad), (0, 0)))
        z_j = jnp.pad(z_j, ((0, pad), (0, 0)))
    # Stack so a leading "parallel" grid axis handles (z_i queries, z_j keys)
    # and (z_j queries, z_i keys) — rowLSE(S) and rowLSE(S^T) — one per
    # TensorCore on v7x (harmlessly sequential on v5e/v6e). This also removes
    # the sublane-direction column-LSE reductions entirely.
    z = jnp.stack([z_i, z_j], axis=0)                     # (2, b_pad, D)

    use_fixed_shift = float(temperature) >= _FIXED_SHIFT_MIN_TEMPERATURE
    has_padding = b_pad != B
    grid = (2, b_pad // key_tile)

    kernel = functools.partial(
        _predann_loss_kernel,
        inv_temperature=1.0 / float(temperature),
        n_valid=B, n_total=n_total, key_tile=key_tile,
        use_fixed_shift=use_fixed_shift, has_padding=has_padding)

    partials = pl.pallas_call(
        kernel,
        out_shape=jax.ShapeDtypeStruct((2, 1, 1), jnp.float32),
        grid_spec=pltpu.PrefetchScalarGridSpec(
            num_scalar_prefetch=0,
            grid=grid,
            in_specs=[
                # Queries: full row block of z[p]; normalized once at c == 0.
                pl.BlockSpec((1, b_pad, D), lambda p, c: (p, 0, 0)),
                # Keys: streamed tile of the opposite block z[1 - p].
                pl.BlockSpec((1, key_tile, D), lambda p, c: (1 - p, c, 0)),
            ],
            out_specs=pl.BlockSpec((1, 1, 1), lambda p, c: (p, 0, 0)),
            scratch_shapes=[
                pltpu.VMEM((b_pad, D), matmul_dtype),  # normalized 1/T-scaled queries
                pltpu.VMEM((b_pad, 1), jnp.float32),   # running row sum-exp
                pltpu.VMEM((b_pad, 1), jnp.float32),   # running row max (online path)
                pltpu.VMEM((1, 1), jnp.float32),       # positive (trace) accumulator
            ],
        ),
        compiler_params=pltpu.CompilerParams(
            dimension_semantics=("parallel", "arbitrary"),
            vmem_limit_bytes=vmem_limit,
        ),
    )(z, z)
    return jnp.sum(partials)


# --------------------------------------------------------------------------- #
# Pure-JAX reference (validation only)
# --------------------------------------------------------------------------- #
def _reference_loss(z_i, z_j, temperature):
    z = jnp.concatenate([z_i, z_j], axis=0).astype(jnp.float32)
    B = z_i.shape[0]
    N = 2 * B
    norms = jnp.linalg.norm(z, axis=-1, keepdims=True)
    gram = jnp.einsum("nd,md->nm", z, z, precision=jax.lax.Precision.HIGHEST)
    sim = gram / jnp.maximum(norms * norms.T, 1e-8) / temperature
    sim_i_j = jnp.diagonal(sim, offset=B)
    sim_j_i = jnp.diagonal(sim, offset=-B)
    pos = jnp.concatenate([sim_i_j, sim_j_i])[:, None]           # (N, 1)

    mask = jnp.ones((N, N), dtype=bool)
    idx = jnp.arange(B)
    mask = mask.at[:B, :B].set(False)
    mask = mask.at[idx, B + idx].set(False)
    mask = mask.at[B + idx, idx].set(False)
    mask = mask.at[B:, B:].set(False)
    neg = sim[mask].reshape(N, -1)

    logits = jnp.concatenate([pos, neg], axis=1)
    lse = jax.scipy.special.logsumexp(logits, axis=1)
    return jnp.sum(lse - logits[:, 0]) / N


if __name__ == "__main__":
    key = jax.random.PRNGKey(0)
    k1, k2, k3, k4, k5, k6 = jax.random.split(key, 6)

    # Small case: B=8 padded to one 128-wide tile (exercises padding masks).
    z_i = jax.random.normal(k1, (8, 32), dtype=jnp.float32)
    z_j = jax.random.normal(k2, (8, 32), dtype=jnp.float32)
    ref = _reference_loss(z_i, z_j, 0.5)
    loss_f32 = jax.block_until_ready(
        predann_loss(z_i, z_j, temperature=0.5, matmul_dtype=jnp.float32))
    assert jnp.allclose(loss_f32, ref, atol=2e-3, rtol=1e-3), (loss_f32, ref)
    loss_bf16 = jax.block_until_ready(predann_loss(z_i, z_j, temperature=0.5))
    assert jnp.allclose(loss_bf16, ref, atol=2e-2, rtol=2e-2), (loss_bf16, ref)

    # Larger case: multiple streamed key tiles (grid (2, 3)), no padding.
    z_i2 = jax.random.normal(k3, (384, 64), dtype=jnp.float32)
    z_j2 = jax.random.normal(k4, (384, 64), dtype=jnp.float32)
    ref2 = _reference_loss(z_i2, z_j2, 0.1)
    loss2_f32 = jax.block_until_ready(
        predann_loss(z_i2, z_j2, temperature=0.1, matmul_dtype=jnp.float32))
    assert jnp.allclose(loss2_f32, ref2, atol=5e-3, rtol=1e-3), (loss2_f32, ref2)
    loss2 = jax.block_until_ready(predann_loss(z_i2, z_j2, temperature=0.1))
    assert jnp.allclose(loss2, ref2, atol=5e-2, rtol=1e-2), (loss2, ref2)

    # Tiny temperature exercises the online-max logsumexp fallback path.
    z_i3 = jax.random.normal(k5, (16, 32), dtype=jnp.float32)
    z_j3 = jax.random.normal(k6, (16, 32), dtype=jnp.float32)
    ref3 = _reference_loss(z_i3, z_j3, 0.01)
    loss3 = jax.block_until_ready(
        predann_loss(z_i3, z_j3, temperature=0.01, matmul_dtype=jnp.float32))
    assert jnp.allclose(loss3, ref3, atol=5e-2, rtol=5e-3), (loss3, ref3)

    print("KERNEL_OK")
</pallas_src>

<mosaic_0001>
module attributes {stable_mosaic.version = 11 : i64} {
  func.func @_predann_loss_kernel(%arg0: i32, %arg1: i32, %arg2: memref<1x128x32xf32, #tpu.memory_space<vmem>>, %arg3: memref<1x128x32xf32, #tpu.memory_space<vmem>>, %arg4: memref<1x1x1xf32, #tpu.memory_space<vmem>>, %arg5: memref<128x32xf32, #tpu.memory_space<vmem>>, %arg6: memref<128x1xf32, #tpu.memory_space<vmem>>, %arg7: memref<128x1xf32, #tpu.memory_space<vmem>>, %arg8: memref<1x1xf32, #tpu.memory_space<vmem>>) attributes {dimension_semantics = [#tpu.dimension_semantics<parallel>, #tpu.dimension_semantics<arbitrary>], iteration_bounds = array<i64: 2, 1>, scalar_prefetch = 0 : i64, scratch_operands = 4 : i64, tpu.core_type = #tpu.core_type<tc>, window_params = [{transform_indices = @transform_0, window_bounds = array<i64: 1, 128, 32>}, {transform_indices = @transform_1, window_bounds = array<i64: 1, 128, 32>}, {transform_indices = @transform_2, window_bounds = array<i64: 1, 1, 1>}]} {
    %c0_i32 = arith.constant 0 : i32
    %0 = arith.cmpi eq, %arg1, %c0_i32 : i32
    %1 = arith.extui %0 : i1 to i32
    %cst = arith.constant 1.000000e-16 : f32
    %cst_0 = arith.constant 2.000000e+00 : f32
    %c0_i32_1 = arith.constant 0 : i32
    %2 = arith.cmpi ne, %1, %c0_i32_1 : i32
    scf.if %2 {
      %c0_27 = arith.constant 0 : index
      %c0_28 = arith.constant 0 : index
      %c0_29 = arith.constant 0 : index
      %46 = vector.load %arg2[%c0_27, %c0_28, %c0_29] : memref<1x128x32xf32, #tpu.memory_space<vmem>>, vector<1x128x32xf32>
      %47 = vector.shape_cast %46 : vector<1x128x32xf32> to vector<128x32xf32>
      %48 = arith.mulf %47, %47 : vector<128x32xf32>
      %cst_30 = arith.constant dense<0.000000e+00> : vector<128xf32>
      %49 = vector.multi_reduction <add>, %48, %cst_30 [1] : vector<128x32xf32> to vector<128xf32>
      %50 = vector.shape_cast %49 : vector<128xf32> to vector<128x1xf32>
      %51 = vector.broadcast %cst : f32 to vector<128x1xf32>
      %52 = arith.maximumf %50, %51 : vector<128x1xf32>
      %53 = math.rsqrt %52 : vector<128x1xf32>
      %54 = vector.broadcast %53 : vector<128x1xf32> to vector<128x32xf32>
      %55 = arith.mulf %47, %54 : vector<128x32xf32>
      %56 = vector.broadcast %cst_0 : f32 to vector<128x32xf32>
      %57 = arith.mulf %55, %56 : vector<128x32xf32>
      %c0_31 = arith.constant 0 : index
      %c0_32 = arith.constant 0 : index
      %58 = vector.load %arg5[%c0_31, %c0_32] : memref<128x32xf32, #tpu.memory_space<vmem>>, vector<128x32xf32>
      tpu.vector_store %arg5[%c0_31, %c0_32], %57 {strides = array<i32>} : memref<128x32xf32, #tpu.memory_space<vmem>>, vector<128x32xf32>,
      %cst_33 = arith.constant 0.000000e+00 : f32
      %59 = vector.broadcast %cst_33 : f32 to vector<128x1xf32>
      %c0_34 = arith.constant 0 : index
      %c0_35 = arith.constant 0 : index
      %60 = vector.load %arg6[%c0_34, %c0_35] : memref<128x1xf32, #tpu.memory_space<vmem>>, vector<128x1xf32>
      tpu.vector_store %arg6[%c0_34, %c0_35], %59 {strides = array<i32>} : memref<128x1xf32, #tpu.memory_space<vmem>>, vector<128x1xf32>,
      %cst_36 = arith.constant 0.000000e+00 : f32
      %61 = vector.broadcast %cst_36 : f32 to vector<1x1xf32>
      %c0_37 = arith.constant 0 : index
      %c0_38 = arith.constant 0 : index
      %62 = vector.load %arg8[%c0_37, %c0_38] : memref<1x1xf32, #tpu.memory_space<vmem>>, vector<1x1xf32>
      tpu.vector_store %arg8[%c0_37, %c0_38], %61 {strides = array<i32>} : memref<1x1xf32, #tpu.memory_space<vmem>>, vector<1x1xf32>,
    } else {
    }
    %c0 = arith.constant 0 : index
    %c0_2 = arith.constant 0 : index
    %c0_3 = arith.constant 0 : index
    %3 = vector.load %arg3[%c0, %c0_2, %c0_3] : memref<1x128x32xf32, #tpu.memory_space<vmem>>, vector<1x128x32xf32>
    %4 = vector.shape_cast %3 : vector<1x128x32xf32> to vector<128x32xf32>
    %5 = arith.mulf %4, %4 : vector<128x32xf32>
    %cst_4 = arith.constant dense<0.000000e+00> : vector<128xf32>
    %6 = vector.multi_reduction <add>, %5, %cst_4 [1] : vector<128x32xf32> to vector<128xf32>
    %7 = vector.shape_cast %6 : vector<128xf32> to vector<128x1xf32>
    %cst_5 = arith.constant 1.000000e-16 : f32
    %8 = vector.broadcast %cst_5 : f32 to vector<128x1xf32>
    %9 = arith.maximumf %7, %8 : vector<128x1xf32>
    %10 = math.rsqrt %9 : vector<128x1xf32>
    %11 = vector.broadcast %10 : vector<128x1xf32> to vector<128x32xf32>
    %12 = arith.mulf %4, %11 : vector<128x32xf32>
    %c0_6 = arith.constant 0 : index
    %c0_7 = arith.constant 0 : index
    %13 = vector.load %arg5[%c0_6, %c0_7] : memref<128x32xf32, #tpu.memory_space<vmem>>, vector<128x32xf32>
    %cst_8 = arith.constant dense<0.000000e+00> : vector<128x128xf32>
    %14 = tpu.matmul %13, %12, %cst_8 {dimension_numbers = #tpu.dot_dimension_numbers<[1], [1], [0], [0], [0, 0, 1, 0], [], []>} : vector<128x32xf32>, vector<128x32xf32>, vector<128x128xf32> -> vector<128x128xf32>
    %c128_i32 = arith.constant 128 : i32
    %15 = arith.muli %arg1, %c128_i32 : i32
    %16 = tpu.iota {dimensions = array<i32: 1>} : vector<128x128xi32>
    %17 = vector.broadcast %15 : i32 to vector<128x128xi32>
    %18 = arith.addi %17, %16 : vector<128x128xi32>
    %c8_i32 = arith.constant 8 : i32
    %19 = vector.broadcast %c8_i32 : i32 to vector<128x128xi32>
    %20 = arith.cmpi slt, %18, %19 : vector<128x128xi32>
    %cst_9 = arith.constant 2.000000e+00 : f32
    %21 = vector.broadcast %cst_9 : f32 to vector<128x128xf32>
    %22 = arith.subf %14, %21 : vector<128x128xf32>
    %23 = math.exp %22 : vector<128x128xf32>
    %cst_10 = arith.constant 0.000000e+00 : f32
    %24 = vector.broadcast %cst_10 : f32 to vector<128x128xf32>
    %25 = arith.select %20, %23, %24 : vector<128x128xi1>, vector<128x128xf32>
    %c0_11 = arith.constant 0 : index
    %c0_12 = arith.constant 0 : index
    %26 = vector.load %arg6[%c0_11, %c0_12] : memref<128x1xf32, #tpu.memory_space<vmem>>, vector<128x1xf32>
    %cst_13 = arith.constant dense<0.000000e+00> : vector<128xf32>
    %27 = vector.multi_reduction <add>, %25, %cst_13 [1] : vector<128x128xf32> to vector<128xf32>
    %28 = vector.shape_cast %27 : vector<128xf32> to vector<128x1xf32>
    %29 = arith.addf %26, %28 : vector<128x1xf32>
    %c0_14 = arith.constant 0 : index
    %c0_15 = arith.constant 0 : index
    %30 = vector.load %arg6[%c0_14, %c0_15] : memref<128x1xf32, #tpu.memory_space<vmem>>, vector<128x1xf32>
    tpu.vector_store %arg6[%c0_14, %c0_15], %29 {strides = array<i32>} : memref<128x1xf32, #tpu.memory_space<vmem>>, vector<128x1xf32>,
    %c128_i32_16 = arith.constant 128 : i32
    %31 = arith.muli %arg1, %c128_i32_16 : i32
    %32 = tpu.assume_multiple %31, 128 : i32
    %33 = arith.index_cast %32 : i32 to index
    %c0_17 = arith.constant 0 : index
    %34 = vector.load %arg5[%33, %c0_17] : memref<128x32xf32, #tpu.memory_space<vmem>>, vector<128x32xf32>
    %35 = arith.mulf %34, %12 : vector<128x32xf32>
    %cst_18 = arith.constant dense<0.000000e+00> : vector<128xf32>
    %36 = vector.multi_reduction <add>, %35, %cst_18 [1] : vector<128x32xf32> to vector<128xf32>
    %37 = vector.shape_cast %36 : vector<128xf32> to vector<128x1xf32>
    %cst_19 = arith.constant dense<0.000000e+00> : vector<1xf32>
    %38 = vector.multi_reduction <add>, %37, %cst_19 [0] : vector<128x1xf32> to vector<1xf32>
    %39 = vector.shape_cast %38 : vector<1xf32> to vector<1x1xf32>
    %c0_20 = arith.constant 0 : index
    %c0_21 = arith.constant 0 : index
    %40 = vector.load %arg8[%c0_20, %c0_21] : memref<1x1xf32, #tpu.memory_space<vmem>>, vector<1x1xf32>
    %41 = arith.addf %40, %39 : vector<1x1xf32>
    %c0_22 = arith.constant 0 : index
    %c0_23 = arith.constant 0 : index
    %42 = vector.load %arg8[%c0_22, %c0_23] : memref<1x1xf32, #tpu.memory_space<vmem>>, vector<1x1xf32>
    tpu.vector_store %arg8[%c0_22, %c0_23], %41 {strides = array<i32>} : memref<1x1xf32, #tpu.memory_space<vmem>>, vector<1x1xf32>,
    %c0_i32_24 = arith.constant 0 : i32
    %43 = arith.cmpi eq, %arg1, %c0_i32_24 : i32
    %44 = arith.extui %43 : i1 to i32
    %cst_25 = arith.constant 2.000000e+00 : f32
    %c0_i32_26 = arith.constant 0 : i32
    %45 = arith.cmpi ne, %44, %c0_i32_26 : i32
    scf.if %45 {
      %c0_27 = arith.constant 0 : index
      %c0_28 = arith.constant 0 : index
      %46 = vector.load %arg6[%c0_27, %c0_28] : memref<128x1xf32, #tpu.memory_space<vmem>>, vector<128x1xf32>
      %47 = math.log %46 : vector<128x1xf32>
      %48 = vector.broadcast %cst_25 : f32 to vector<128x1xf32>
      %49 = arith.addf %48, %47 : vector<128x1xf32>
      %50 = tpu.iota {dimensions = array<i32: 0>} : vector<128x1xi32>
      %c8_i32_29 = arith.constant 8 : i32
      %51 = vector.broadcast %c8_i32_29 : i32 to vector<128x1xi32>
      %52 = arith.cmpi slt, %50, %51 : vector<128x1xi32>
      %cst_30 = arith.constant 0.000000e+00 : f32
      %53 = vector.broadcast %cst_30 : f32 to vector<128x1xf32>
      %54 = arith.select %52, %49, %53 : vector<128x1xi1>, vector<128x1xf32>
      %cst_31 = arith.constant dense<0.000000e+00> : vector<1xf32>
      %55 = vector.multi_reduction <add>, %54, %cst_31 [0] : vector<128x1xf32> to vector<1xf32>
      %56 = vector.shape_cast %55 : vector<1xf32> to vector<1x1xf32>
      %c0_32 = arith.constant 0 : index
      %c0_33 = arith.constant 0 : index
      %57 = vector.load %arg8[%c0_32, %c0_33] : memref<1x1xf32, #tpu.memory_space<vmem>>, vector<1x1xf32>
      %58 = arith.subf %56, %57 : vector<1x1xf32>
      %cst_34 = arith.constant 6.250000e-02 : f32
      %59 = vector.broadcast %cst_34 : f32 to vector<1x1xf32>
      %60 = arith.mulf %58, %59 : vector<1x1xf32>
      %61 = vector.shape_cast %60 : vector<1x1xf32> to vector<1x1x1xf32>
      %c0_35 = arith.constant 0 : index
      %c0_36 = arith.constant 0 : index
      %c0_37 = arith.constant 0 : index
      %62 = vector.load %arg4[%c0_35, %c0_36, %c0_37] : memref<1x1x1xf32, #tpu.memory_space<vmem>>, vector<1x1x1xf32>
      tpu.vector_store %arg4[%c0_35, %c0_36, %c0_37], %61 {strides = array<i32>} : memref<1x1x1xf32, #tpu.memory_space<vmem>>, vector<1x1x1xf32>,
    } else {
    }
    return
  }
  func.func @transform_0(%arg0: i32, %arg1: i32) -> (i32, i32, i32) {
    %c0_i32 = arith.constant 0 : i32
    %c0_i32_0 = arith.constant 0 : i32
    %c0_i32_1 = arith.constant 0 : i32
    return %arg0, %c0_i32, %c0_i32_0 : i32, i32, i32
  }
  func.func @transform_1(%arg0: i32, %arg1: i32) -> (i32, i32, i32) {
    %c1_i32 = arith.constant 1 : i32
    %0 = arith.subi %c1_i32, %arg0 : i32
    %c0_i32 = arith.constant 0 : i32
    %c0_i32_0 = arith.constant 0 : i32
    return %0, %arg1, %c0_i32 : i32, i32, i32
  }
  func.func @transform_2(%arg0: i32, %arg1: i32) -> (i32, i32, i32) {
    %c0_i32 = arith.constant 0 : i32
    %c0_i32_0 = arith.constant 0 : i32
    %c0_i32_1 = arith.constant 0 : i32
    return %arg0, %c0_i32, %c0_i32_0 : i32, i32, i32
  }
}

</mosaic_0001>

<bundles_post_ra>
// kernel: tpu_custom_call.1
= control target key start
LH: loop header
LB: loop body
LE: loop exit
PB: predicated region body
PF: predicated region fallthrough
CT: control target
= control target key end

     0   :  { %s1630_s9 = smov 0   ;;  %s1632_s10 = smov 0   ;;  %s2189_s0 = inlined_call_operand.vmem [shape: f32[2,128,32], index: 0, kind: input, shape index: {}]   ;;  %s2190_s1 = inlined_call_operand.vmem [shape: f32[2,128,32], index: 1, kind: input, shape index: {}]   ;;  %s2191_s2 = inlined_call_operand.vmem [shape: f32[2,1,1], index: 2, kind: output, shape index: {}]  }
   0x1   :  { %s1634_s11 = smov 0  }
   0x2 LB: > { %s24_s12 = sadd.s32 1, %s1608_s10  ;;  %p1258_p0 = scmp.ge.s32.totalorder %s1612_s11, 1  ;;  %s1612_s11 = sphi %s1634_s11, %s12_s11   ;;  %s1608_s10 = sphi %s1632_s10, %s2195_s10   ;;  %s1604_s9 = sphi %s1630_s9, %s2194_s9  }
   0x3   : > { %p26_p1 = scmp.ge.s32.totalorder %s24_s12, 2  ;;  %p145_p2 = scmp.lt.s32.totalorder %s1612_s11, 3 }
   0x5   : > { %s2197_s12 = smov (%p26_p1, %s24_s12), 0  ;;  %p146_p3 = pnand %p1258_p0, %p145_p2 }
   0x6   : > { %s180_s13 = ssub.s32 (!%p146_p3), 1, %s1604_s9  ;;  %vm231_vm0 = vcmask (!%p146_p3), 261120   ;;  %p175_p5 = scmp.lt.s32.totalorder (!%p146_p3), %s1604_s9, 1  ;;  %vm360_vm2 = vcmask (!%p146_p3), 7168   ;;  %vm377_vm4 = vcmask (!%p146_p3), 0  }
   0x7   : > { %149 = sbr.rel (%p146_p3) target bundleno = 664 (0x298), region = 28  ;;  %p182_p4 = scmp.lt.s32.totalorder (!%p146_p3), %s180_s13, 1  ;;  %vm1872_vm1 = vmpackc.low (!%p146_p3), %vm231_vm0, %vm231_vm0 }
   0xe   : > { %s2199_s13 = smov (!%p182_p4, %s180_s13), 1  ;;  %s2201_s9 = smov (!%p175_p5, %s1604_s9), 1 }
   0xf   : > { %s1314_s14 = sshll.u32 %s2199_s13, 7  ;;  %s1313_s18 = sshll.u32 %s2201_s9, 7 }
  0x10   : > { %s1654_s17 = scalar_lea.vmem %s2190_s1, %s1314_s14  ;;  %s1740_s21 = scalar_lea.vmem %s2189_s0, %s1313_s18 }
  0x11   : > { %v1657_v0 = vld [vmem:[%s1654_s17 + $0x10] sm:$0xff]  ;;  %v1660_v1 = vld [vmem:[%s1654_s17] sm:$0xff]  ;;  %v1663_v2 = vld [vmem:[%s1654_s17 + $0x18] sm:$0xff]  ;;  %s194_s24 = scalar_lea.vmem %s2191_s2, %s2201_s9 }
  0x12   : > { %v397_v3 = vmul.f32 %v1657_v0, %v1657_v0  ;;  %v395_v4 = vmul.f32 %v1660_v1, %v1660_v1  ;;  %v398_v5 = vmul.f32 %v1663_v2, %v1663_v2  ;;  %v1672_v6 = vld [vmem:[%s1654_s17 + $0x8] sm:$0xff]  ;;  %v1680_v9 = vld [vmem:[%s1654_s17 + $0x20] sm:$0xff]  ;;  %v1691_v16 = vld [vmem:[%s1654_s17 + $0x38] sm:$0xff] }
  0x13   : > { %v396_v7 = vmul.f32 %v1672_v6, %v1672_v6  ;;  %v1677_v8 = vld [vmem:[%s1654_s17 + $0x28] sm:$0xff]  ;;  %v399_v15 = vmul.f32 %v1680_v9, %v1680_v9  ;;  %v1694_v17 = vld [vmem:[%s1654_s17 + $0x30] sm:$0xff]  ;;  %v402_v20 = vmul.f32 %v1691_v16, %v1691_v16  ;;  %v1707_v23 = vld [vmem:[%s1654_s17 + $0x40] sm:$0xff] }
  0x14   : > { %v418_v10 = vsel %vm231_vm0, %v397_v3, 0.0  ;;  %v412_v11 = vsel %vm231_vm0, %v395_v4, 0.0  ;;  %v421_v12 = vsel %vm231_vm0, %v398_v5, 0.0  ;;  %v400_v14 = vmul.f32 %v1677_v8, %v1677_v8  ;;  %v1704_v22 = vld [vmem:[%s1654_s17 + $0x48] sm:$0xff]  ;;  %v1719_v28 = vld [vmem:[%s1654_s17 + $0x58] sm:$0xff]  ;;  %v1722_v29 = vld [vmem:[%s1654_s17 + $0x50] sm:$0xff] }
  0x15   : > { %419 = vadd.xlane.f32.xlu1 %v418_v10  ;;  %413 = vadd.xlane.f32.xlu0 %v412_v11  ;;  %v415_v13 = vsel %vm231_vm0, %v396_v7, 0.0  ;;  %v424_v19 = vsel %vm231_vm0, %v399_v15, 0.0  ;;  %v401_v21 = vmul.f32 %v1694_v17, %v1694_v17  ;;  %v433_v24 = vsel %vm231_vm0, %v402_v20, 0.0  ;;  %v1732_v34 = vld [vmem:[%s1654_s17 + $0x68] sm:$0xff]  ;;  %v1735_v35 = vld [vmem:[%s1654_s17 + $0x60] sm:$0xff]  ;;  %v1761_v46 = vld [vmem:[%s1654_s17 + $0x78] sm:$0xff] }
  0x16   : > { %v427_v18 = vsel %vm231_vm0, %v400_v14, 0.0  ;;  %v404_v26 = vmul.f32 %v1704_v22, %v1704_v22  ;;  %v403_v27 = vmul.f32 %v1707_v23, %v1707_v23  ;;  %v406_v32 = vmul.f32 %v1719_v28, %v1719_v28  ;;  %v1749_v40 = vld [vmem:[%s1740_s21 + $0x8] sm:$0xff]  ;;  %v1752_v41 = vld [vmem:[%s1740_s21] sm:$0xff]  ;;  %v1764_v47 = vld [vmem:[%s1654_s17 + $0x70] sm:$0xff] }
  0x17   : > { %v430_v25 = vsel %vm231_vm0, %v401_v21, 0.0  ;;  %v405_v33 = vmul.f32 %v1722_v29, %v1722_v29  ;;  %v408_v38 = vmul.f32 %v1732_v34, %v1732_v34  ;;  %v407_v39 = vmul.f32 %v1735_v35, %v1735_v35  ;;  %v1773_v52 = vld [vmem:[%s1740_s21 + $0x48] sm:$0xff]  ;;  %v1776_v53 = vld [vmem:[%s1740_s21 + $0x40] sm:$0xff]  ;;  %v1785_v58 = vld [vmem:[%s1740_s21 + $0x50] sm:$0xff] }
  0x18   : > { %v439_v30 = vsel %vm231_vm0, %v404_v26, 0.0  ;;  %v436_v31 = vsel %vm231_vm0, %v403_v27, 0.0  ;;  %v445_v36 = vsel %vm231_vm0, %v406_v32, 0.0  ;;  %v216_v44 = vmul.f32 %v1749_v40, %v1749_v40  ;;  %v1788_v59 = vld [vmem:[%s1740_s21 + $0x10] sm:$0xff]  ;;  %v1797_v3 = vld [vmem:[%s1740_s21 + $0x58] sm:$0xff]  ;;  %v1821_v20 = vld [vmem:[%s1740_s21 + $0x68] sm:$0xff] }
  0x19   : > { %422 = vadd.xlane.f32.xlu1 %v421_v12  ;;  %416 = vadd.xlane.f32.xlu0 %v415_v13  ;;  %v442_v37 = vsel %vm231_vm0, %v405_v33, 0.0  ;;  %v451_v42 = vsel %vm231_vm0, %v408_v38, 0.0  ;;  %v448_v43 = vsel %vm231_vm0, %v407_v39, 0.0  ;;  %v215_v45 = vmul.f32 %v1752_v41, %v1752_v41  ;;  %v1800_v4 = vld [vmem:[%s1740_s21 + $0x18] sm:$0xff]  ;;  %v1809_v12 = vld [vmem:[%s1740_s21 + $0x60] sm:$0xff]  ;;  %v1824_v21 = vld [vmem:[%s1740_s21 + $0x28] sm:$0xff] }
  0x1a   : > { %v235_v48 = vsel %vm231_vm0, %v216_v44, 0.0  ;;  %v410_v50 = vmul.f32 %v1761_v46, %v1761_v46  ;;  %v409_v51 = vmul.f32 %v1764_v47, %v1764_v47  ;;  %v224_v56 = vmul.f32 %v1773_v52, %v1773_v52  ;;  %v1812_v13 = vld [vmem:[%s1740_s21 + $0x20] sm:$0xff]  ;;  %v1845_v38 = vld [vmem:[%s1740_s21 + $0x78] sm:$0xff] }
  0x1b   : > { %v232_v49 = vsel %vm231_vm0, %v215_v45, 0.0  ;;  %v223_v57 = vmul.f32 %v1776_v53, %v1776_v53  ;;  %v225_v62 = vmul.f32 %v1785_v58, %v1785_v58  ;;  %v217_v63 = vmul.f32 %v1788_v59, %v1788_v59  ;;  %v1848_v39 = vld [vmem:[%s1740_s21 + $0x38] sm:$0xff] }
  0x1c   : > { %v457_v54 = vsel %vm231_vm0, %v410_v50, 0.0  ;;  %v454_v55 = vsel %vm231_vm0, %v409_v51, 0.0  ;;  %v259_v60 = vsel %vm231_vm0, %v224_v56, 0.0  ;;  %v226_v10 = vmul.f32 %v1797_v3, %v1797_v3 }
  0x1d   : > { %428 = vadd.xlane.f32.xlu1 %v427_v18  ;;  %425 = vadd.xlane.f32.xlu0 %v424_v19  ;;  %v256_v61 = vsel %vm231_vm0, %v223_v57, 0.0  ;;  %v262_v5 = vsel %vm231_vm0, %v225_v62, 0.0  ;;  %v238_v7 = vsel %vm231_vm0, %v217_v63, 0.0  ;;  %v218_v11 = vmul.f32 %v1800_v4, %v1800_v4 }
  0x1e   : > { %v265_v14 = vsel %vm231_vm0, %v226_v10, 0.0  ;;  %v227_v18 = vmul.f32 %v1809_v12, %v1809_v12  ;;  %v219_v19 = vmul.f32 %v1812_v13, %v1812_v13  ;;  %v228_v26 = vmul.f32 %v1821_v20, %v1821_v20 }
  0x1f   : > { %v241_v15 = vsel %vm231_vm0, %v218_v11, 0.0  ;;  %v220_v27 = vmul.f32 %v1824_v21, %v1824_v21  ;;  %v230_v44 = vmul.f32 %v1845_v38, %v1845_v38  ;;  %v222_v45 = vmul.f32 %v1848_v39, %v1848_v39 }
  0x20   : > { %v271_v32 = vsel %vm231_vm0, %v228_v26, 0.0 }
  0x21   : > { %434 = vadd.xlane.f32.xlu1 %v433_v24  ;;  %431 = vadd.xlane.f32.xlu0 %v430_v25  ;;  %v268_v24 = vsel %vm231_vm0, %v227_v18, 0.0  ;;  %v244_v25 = vsel %vm231_vm0, %v219_v19, 0.0  ;;  %v247_v33 = vsel %vm231_vm0, %v220_v27, 0.0 }
  0x25   : > { %440 = vadd.xlane.f32.xlu1 %v439_v30  ;;  %437 = vadd.xlane.f32.xlu0 %v436_v31  ;;  %v1833_v30 = vld [vmem:[%s1740_s21 + $0x70] sm:$0xff] }
  0x26   : > { %v1836_v31 = vld [vmem:[%s1740_s21 + $0x30] sm:$0xff] }
  0x29   : > { %446 = vadd.xlane.f32.xlu1 %v445_v36  ;;  %443 = vadd.xlane.f32.xlu0 %v442_v37  ;;  %v229_v36 = vmul.f32 %v1833_v30, %v1833_v30  ;;  %v221_v37 = vmul.f32 %v1836_v31, %v1836_v31 }
  0x2d   : > { %452 = vadd.xlane.f32.xlu1 %v451_v42  ;;  %449 = vadd.xlane.f32.xlu0 %v448_v43  ;;  %v274_v42 = vsel %vm231_vm0, %v229_v36, 0.0  ;;  %v250_v43 = vsel %vm231_vm0, %v221_v37, 0.0 }
  0x31   : > { %236 = vadd.xlane.f32.xlu1 %v235_v48  ;;  %233 = vadd.xlane.f32.xlu0 %v232_v49  ;;  %v277_v48 = vsel %vm231_vm0, %v230_v44, 0.0  ;;  %v253_v49 = vsel %vm231_vm0, %v222_v45, 0.0 }
  0x35   : > { %458 = vadd.xlane.f32.xlu1 %v457_v54  ;;  %455 = vadd.xlane.f32.xlu0 %v454_v55 }
  0x39   : > { %260 = vadd.xlane.f32.xlu1 %v259_v60  ;;  %257 = vadd.xlane.f32.xlu0 %v256_v61 }
  0x3d   : > { %263 = vadd.xlane.f32.xlu1 %v262_v5  ;;  %239 = vadd.xlane.f32.xlu0 %v238_v7 }
  0x41   : > { %266 = vadd.xlane.f32.xlu1 %v265_v14  ;;  %242 = vadd.xlane.f32.xlu0 %v241_v15 }
  0x45   : > { %269 = vadd.xlane.f32.xlu1 %v268_v24  ;;  %245 = vadd.xlane.f32.xlu0 %v244_v25 }
  0x49   : > { %272 = vadd.xlane.f32.xlu1 %v271_v32  ;;  %248 = vadd.xlane.f32.xlu0 %v247_v33 }
  0x4d   : > { %275 = vadd.xlane.f32.xlu1 %v274_v42  ;;  %251 = vadd.xlane.f32.xlu0 %v250_v43 }
  0x51   : > { %278 = vadd.xlane.f32.xlu1 %v277_v48  ;;  %254 = vadd.xlane.f32.xlu0 %v253_v49 }
  0xa2   : > { %v420_v50 = vpop.xlane.xlu1 %419  ;;  %v414_v51 = vpop.xlane.xlu0 %413 }
  0xa3   : > { %v462_v54 = vmax.f32 %v420_v50, 1e-16  ;;  %v460_v55 = vmax.f32 %v414_v51, 1e-16 }
  0xa5   : > { %1492 = vrsqrt.f32 %v462_v54 }
  0xa6   : > { %v423_v56 = vpop.xlane.xlu1 %422  ;;  %v417_v57 = vpop.xlane.xlu0 %416  ;;  %1494 = vrsqrt.f32 %v460_v55 }
  0xa7   : > { %v463_v60 = vmax.f32 %v423_v56, 1e-16  ;;  %v461_v61 = vmax.f32 %v417_v57, 1e-16 }
  0xa9   : > { %1496 = vrsqrt.f32 %v463_v60 }
  0xaa   : > { %1498 = vrsqrt.f32 %v461_v61  ;;  %v429_v62 = vpop.xlane.xlu1 %428  ;;  %v426_v63 = vpop.xlane.xlu0 %425 }
  0xab   : > { %v465_v5 = vmax.f32 %v429_v62, 1e-16  ;;  %v464_v7 = vmax.f32 %v426_v63, 1e-16 }
  0xad   : > { %1500 = vrsqrt.f32 %v465_v5 }
  0xae   : > { %1502 = vrsqrt.f32 %v464_v7  ;;  %v435_v10 = vpop.xlane.xlu1 %434  ;;  %v432_v11 = vpop.xlane.xlu0 %431 }
  0xaf   : > { %v1493_v14 = vpop.eup %1492  ;;  %v467_v15 = vmax.f32 %v435_v10, 1e-16  ;;  %v466_v19 = vmax.f32 %v432_v11, 1e-16 }
  0xb0   : > { %v1495_v18 = vpop.eup %1494  ;;  %v1859_v27 = vmul.f32 %v1493_v14, %v1657_v0 }
  0xb1   : > { %1504 = vrsqrt.f32 %v467_v15  ;;  %v1865_v36 = vmul.f32 %v1495_v18, %v1660_v1 }
  0xb2   : > { %v441_v24 = vpop.xlane.xlu1 %440  ;;  %v438_v25 = vpop.xlane.xlu0 %437  ;;  %1506 = vrsqrt.f32 %v466_v19 }
  0xb3   : > { %v1497_v26 = vpop.eup %1496  ;;  %v469_v48 = vmax.f32 %v441_v24, 1e-16 }
  0xb4   : > { %v1499_v32 = vpop.eup %1498  ;;  %v1862_v33 = vmul.f32 %v1497_v26, %v1663_v2 }
  0xb5   : > { %v1868_v37 = vmul.f32 %v1499_v32, %v1672_v6  ;;  %v468_v6 = vmax.f32 %v438_v25, 1e-16  ;;  %1508 = vrsqrt.f32 %v469_v48 }
  0xb6   : > { %v447_v42 = vpop.xlane.xlu1 %446  ;;  %v444_v43 = vpop.xlane.xlu0 %443  ;;  %v1409_v1 = vpack.c.bf16 %v1862_v33, %v1859_v27 }
  0xb7   : > { %v1501_v0 = vpop.eup %1500  ;;  %v1403_v2 = vpack.c.bf16 %v1868_v37, %v1865_v36  ;;  %1510 = vrsqrt.f32 %v468_v6  ;;  %v471_v5 = vmax.f32 %v447_v42, 1e-16  ;;  %v470_v7 = vmax.f32 %v444_v43, 1e-16 }
  0xb8   : > { %v1503_v45 = vpop.eup %1502  ;;  %v1896_v54 = vmul.f32 %v1501_v0, %v1677_v8 }
  0xb9   : > { %1405 = vmatprep.subr.msk.bf16.mxu0 %vm1872_vm1, %v1403_v2  ;;  %1451 = vmatprep.subr.msk.bf16.mxu1 %vm1872_vm1, %v1403_v2  ;;  %v1893_v51 = vmul.f32 %v1503_v45, %v1680_v9 }
  0xba   : > { %1408 = vmatpush3.bf16.xpose.msk.msra.mxu0 %vm1872_vm1, %v1403_v2  ;;  %1459 = vmatpush3.bf16.xpose.msk.msra.mxu1 %vm1872_vm1, %v1403_v2  ;;  %v453_v49 = vpop.xlane.xlu1 %452  ;;  %v450_v50 = vpop.xlane.xlu0 %449 }
  0xbb   : > { %1411 = vmatprep.subr.msk.bf16.mxu0 %vm1872_vm1, %v1409_v1  ;;  %1452 = vmatprep.subr.msk.bf16.mxu1 %vm1872_vm1, %v1409_v1  ;;  %v1505_v57 = vpop.eup %1504  ;;  %v1415_v62 = vpack.c.bf16 %v1896_v54, %v1893_v51  ;;  %v473_v14 = vmax.f32 %v453_v49, 1e-16  ;;  %v472_v42 = vmax.f32 %v450_v50, 1e-16 }
  0xbc   : > { %v1507_v63 = vpop.eup %1506  ;;  %v1914_v11 = vmul.f32 %v1505_v57, %v1691_v16 }
  0xbd   : > { %v1911_v10 = vmul.f32 %v1507_v63, %v1694_v17 }
  0xbe   : > { %v237_v55 = vpop.xlane.xlu1 %236  ;;  %v234_v56 = vpop.xlane.xlu0 %233 }
  0xbf   : > { %v281_v60 = vmax.f32 %v237_v55, 1e-16  ;;  %v280_v61 = vmax.f32 %v234_v56, 1e-16  ;;  %v1509_v19 = vpop.eup %1508  ;;  %v1421_v26 = vpack.c.bf16 %v1914_v11, %v1911_v10 }
  0xc0   : > { %v1930_v45 = vmul.f32 %v1509_v19, %v1704_v22 }
  0xc1   : > { %1512 = vrsqrt.f32 %v281_v60  ;;  %v1511_v32 = vpop.eup %1510 }
  0xc2   : > { %1514 = vrsqrt.f32 %v280_v61  ;;  %1414 = vmatpush3.bf16.xpose.msk.msra.mxu0 %vm1872_vm1, %v1409_v1  ;;  %1460 = vmatpush3.bf16.xpose.msk.msra.mxu1 %vm1872_vm1, %v1409_v1  ;;  %v459_v8 = vpop.xlane.xlu1 %458  ;;  %v1904_v9 = vpop.xlane.xlu0 %455  ;;  %v1927_v1 = vmul.f32 %v1511_v32, %v1707_v23 }
  0xc3   : > { %1417 = vmatprep.subr.msk.bf16.mxu0 %vm1872_vm1, %v1415_v62  ;;  %1453 = vmatprep.subr.msk.bf16.mxu1 %vm1872_vm1, %v1415_v62  ;;  %1516 = vrsqrt.f32 %v471_v5  ;;  %v475_v55 = vmax.f32 %v459_v8, 1e-16 }
  0xc4   : > { %1518 = vrsqrt.f32 %v470_v7  ;;  %v1427_v22 = vpack.c.bf16 %v1930_v45, %v1927_v1 }
  0xc5   : > { %1520 = vrsqrt.f32 %v473_v14 }
  0xc6   : > { %v261_v15 = vpop.xlane.xlu1 %260  ;;  %v258_v18 = vpop.xlane.xlu0 %257 }
  0xc7   : > { %v289_v24 = vmax.f32 %v261_v15, 1e-16  ;;  %v288_v25 = vmax.f32 %v258_v18, 1e-16 }
  0xc9   : > { %1522 = vrsqrt.f32 %v289_v24 }
  0xca   : > { %1524 = vrsqrt.f32 %v288_v25  ;;  %1420 = vmatpush3.bf16.xpose.msk.msra.mxu0 %vm1872_vm1, %v1415_v62  ;;  %1461 = vmatpush3.bf16.xpose.msk.msra.mxu1 %vm1872_vm1, %v1415_v62  ;;  %v264_v16 = vpop.xlane.xlu1 %263  ;;  %v240_v17 = vpop.xlane.xlu0 %239 }
  0xcb   : > { %v1513_v43 = vpop.eup %1512  ;;  %v290_v0 = vmax.f32 %v264_v16, 1e-16  ;;  %v282_v2 = vmax.f32 %v240_v17, 1e-16  ;;  %1423 = vmatprep.subr.msk.bf16.mxu0 %vm1872_vm1, %v1421_v26  ;;  %1454 = vmatprep.subr.msk.bf16.mxu1 %vm1872_vm1, %v1421_v26  ;;  %1526 = vrsqrt.f32 %v472_v42 }
  0xcc   : > { %v1515_v48 = vpop.eup %1514  ;;  %v313_v6 = vmul.f32 %v1513_v43, %v1749_v40  ;;  %v474_v40 = vmax.f32 %v1904_v9, 1e-16 }
  0xcd   : > { %v312_v49 = vmul.f32 %v1515_v48, %v1752_v41  ;;  %1528 = vrsqrt.f32 %v290_v0  ;;  %v1517_v60 = vpop.eup %1516 }
  0xce   : > { %v329_v50 = vmul.f32 2.0, %v313_v6  ;;  %1530 = vrsqrt.f32 %v282_v2  ;;  %v267_v56 = vpop.xlane.xlu1 %266  ;;  %v243_v57 = vpop.xlane.xlu0 %242  ;;  %v1944_v8 = vmul.f32 %v1517_v60, %v1719_v28 }
  0xcf   : > { %v328_v61 = vmul.f32 2.0, %v312_v49  ;;  %v291_v62 = vmax.f32 %v267_v56, 1e-16  ;;  %v283_v23 = vmax.f32 %v243_v57, 1e-16  ;;  %v1519_v63 = vpop.eup %1518 }
  0xd0   : > { %345 = vst.msk [vmem:[#allocation2 + $0x8] sm:$0xff] %vm231_vm0, %v329_v50  ;;  %v1521_v41 = vpop.eup %1520  ;;  %v1951_v18 = vmul.f32 %v1519_v63, %v1722_v29 }
  0xd1   : > { %344 = vst.msk [vmem:[#allocation2] sm:$0xff] %vm231_vm0, %v328_v61  ;;  %1532 = vrsqrt.f32 %v291_v62 }
  0xd2   : > { %1534 = vrsqrt.f32 %v283_v23  ;;  %1426 = vmatpush3.bf16.xpose.msk.msra.mxu0 %vm1872_vm1, %v1421_v26  ;;  %1462 = vmatpush3.bf16.xpose.msk.msra.mxu1 %vm1872_vm1, %v1421_v26  ;;  %v270_v5 = vpop.xlane.xlu1 %269  ;;  %v246_v7 = vpop.xlane.xlu0 %245  ;;  %v1433_v29 = vpack.c.bf16 %v1944_v8, %v1951_v18 }
  0xd3   : > { %v1523_v14 = vpop.eup %1522  ;;  %1536 = vrsqrt.f32 %v475_v55  ;;  %v292_v15 = vmax.f32 %v270_v5, 1e-16  ;;  %v284_v9 = vmax.f32 %v246_v7, 1e-16  ;;  %1429 = vmatprep.subr.msk.bf16.mxu0 %vm1872_vm1, %v1427_v22  ;;  %1455 = vmatprep.subr.msk.bf16.mxu1 %vm1872_vm1, %v1427_v22  ;;  %v1967_v55 = vmul.f32 %v1521_v41, %v1732_v34 }
  0xd4   : > { %v1525_v19 = vpop.eup %1524  ;;  %1538 = vrsqrt.f32 %v474_v40  ;;  %v321_v24 = vmul.f32 %v1523_v14, %v1773_v52 }
  0xd5   : > { %v320_v28 = vmul.f32 %v1525_v19, %v1776_v53  ;;  %1540 = vrsqrt.f32 %v292_v15  ;;  %v1527_v25 = vpop.eup %1526 }
  0xd6   : > { %v337_v26 = vmul.f32 2.0, %v321_v24  ;;  %1542 = vrsqrt.f32 %v284_v9  ;;  %v273_v32 = vpop.xlane.xlu1 %272  ;;  %v249_v42 = vpop.xlane.xlu0 %248  ;;  %v1976_v57 = vmul.f32 %v1527_v25, %v1735_v35 }
  0xd7   : > { %v1529_v16 = vpop.eup %1528  ;;  %v336_v17 = vmul.f32 2.0, %v320_v28  ;;  %v293_v43 = vmax.f32 %v273_v32, 1e-16  ;;  %v285_v0 = vmax.f32 %v249_v42, 1e-16  ;;  %v1955_v2 = vld [vmem:[#allocation2 + $0x8] sm:$0xff] }
  0xd8   : > { %v1531_v48 = vpop.eup %1530  ;;  %353 = vst.msk [vmem:[#allocation2 + $0x48] sm:$0xff] %vm231_vm0, %v337_v26  ;;  %v322_v52 = vmul.f32 %v1529_v16, %v1785_v58  ;;  %v934_v53 = vmul.f32 %v1955_v2, %v1868_v37  ;;  %v917_v6 = vld [vmem:[#allocation2] sm:$0xff] }
  0xd9   : > { %352 = vst.msk [vmem:[#allocation2 + $0x40] sm:$0xff] %vm231_vm0, %v336_v17  ;;  %v314_v49 = vmul.f32 %v1531_v48, %v1788_v59  ;;  %1544 = vrsqrt.f32 %v293_v43  ;;  %v933_v50 = vmul.f32 %v917_v6, %v1865_v36  ;;  %1379 = vmatprep.mubr.msk.f32.mxu0 %vm231_vm0, %v917_v6 }
  0xda   : > { %v338_v56 = vmul.f32 2.0, %v322_v52  ;;  %1546 = vrsqrt.f32 %v285_v0  ;;  %1432 = vmatpush3.bf16.xpose.msk.msra.mxu0 %vm1872_vm1, %v1427_v22  ;;  %1463 = vmatpush3.bf16.xpose.msk.msra.mxu1 %vm1872_vm1, %v1427_v22  ;;  %v276_v58 = vpop.xlane.xlu1 %275  ;;  %v252_v37 = vpop.xlane.xlu0 %251  ;;  %v952_v59 = vsel %vm231_vm0, %v934_v53, 0.0 }
  0xdb   : > { %v1533_v36 = vpop.eup %1532  ;;  %v330_v34 = vmul.f32 2.0, %v314_v49  ;;  %v294_v60 = vmax.f32 %v276_v58, 1e-16  ;;  %v286_v61 = vmax.f32 %v252_v37, 1e-16  ;;  %953 = vadd.xlane.f32.xlu1 %v952_v59  ;;  %v949_v62 = vsel %vm231_vm0, %v933_v50, 0.0  ;;  %1435 = vmatprep.subr.msk.bf16.mxu0 %vm1872_vm1, %v1433_v29 }
  0xdc   : > { %v1535_v23 = vpop.eup %1534  ;;  %354 = vst.msk [vmem:[#allocation2 + $0x50] sm:$0xff] %vm231_vm0, %v338_v56  ;;  %v323_v22 = vmul.f32 %v1533_v36, %v1797_v3  ;;  %950 = vadd.xlane.f32.xlu0 %v949_v62  ;;  %1456 = vmatprep.subr.msk.bf16.mxu1 %vm1872_vm1, %v1433_v29  ;;  %v1439_v3 = vpack.c.bf16 %v1967_v55, %v1976_v57 }
  0xdd   : > { %v1537_v35 = vpop.eup %1536  ;;  %346 = vst.msk [vmem:[#allocation2 + $0x10] sm:$0xff] %vm231_vm0, %v330_v34  ;;  %v315_v63 = vmul.f32 %v1535_v23, %v1800_v4  ;;  %1548 = vrsqrt.f32 %v294_v60 }
  0xde   : > { %v1539_v40 = vpop.eup %1538  ;;  %v339_v41 = vmul.f32 2.0, %v323_v22  ;;  %1550 = vrsqrt.f32 %v286_v61  ;;  %v279_v5 = vpop.xlane.xlu1 %278  ;;  %v507_v42 = vmul.f32 %v1537_v35, %v1761_v46 }
  0xdf   : > { %v255_v7 = vpop.xlane.xlu0 %254  ;;  %v1541_v14 = vpop.eup %1540  ;;  %v331_v15 = vmul.f32 2.0, %v315_v63  ;;  %v295_v9 = vmax.f32 %v279_v5, 1e-16  ;;  %v926_v63 = vld [vmem:[#allocation2 + $0x48] sm:$0xff] }
  0xe0   : > { %v287_v19 = vmax.f32 %v255_v7, 1e-16  ;;  %v1543_v24 = vpop.eup %1542  ;;  %355 = vst.msk [vmem:[#allocation2 + $0x58] sm:$0xff] %vm231_vm0, %v339_v41  ;;  %v324_v28 = vmul.f32 %v1541_v14, %v1809_v12  ;;  %v1991_v25 = vld [vmem:[#allocation2 + $0x40] sm:$0xff]  ;;  %v942_v41 = vmul.f32 %v926_v63, %v1930_v45 }
  0xe1   : > { %347 = vst.msk [vmem:[#allocation2 + $0x18] sm:$0xff] %vm231_vm0, %v331_v15  ;;  %v316_v4 = vmul.f32 %v1543_v24, %v1812_v13  ;;  %1552 = vrsqrt.f32 %v295_v9  ;;  %1391 = vmatprep.mubr.msk.f32.mxu1 %vm231_vm0, %v1991_v25  ;;  %v2006_v13 = vmul.f32 %v1539_v40, %v1764_v47  ;;  %v941_v15 = vmul.f32 %v1991_v25, %v1927_v1 }
  0xe2   : > { %v340_v26 = vmul.f32 2.0, %v324_v28  ;;  %1554 = vrsqrt.f32 %v287_v19  ;;  %1438 = vmatpush3.bf16.xpose.msk.msra.mxu0 %vm1872_vm1, %v1433_v29  ;;  %1464 = vmatpush3.bf16.xpose.msk.msra.mxu1 %vm1872_vm1, %v1433_v29  ;;  %v1614_v25 = vmov 0.0  }
  0xe3   : > { %v1545_v32 = vpop.eup %1544  ;;  %v332_v12 = vmul.f32 2.0, %v316_v4  ;;  %1441 = vmatprep.subr.msk.bf16.mxu0 %vm1872_vm1, %v1439_v3  ;;  %1457 = vmatprep.subr.msk.bf16.mxu1 %vm1872_vm1, %v1439_v3  ;;  %v1445_v6 = vpack.c.bf16 %v507_v42, %v2006_v13  ;;  %v927_v14 = vld [vmem:[#allocation2 + $0x50] sm:$0xff]  ;;  %362 = vst.msk [vmem:[#allocation3 + $0x8] sm:$0xff] %vm360_vm2, %v1614_v25  ;;  %361 = vst.msk [vmem:[#allocation3] sm:$0xff] %vm360_vm2, %v1614_v25 }
  0xe4   : > { %v1547_v16 = vpop.eup %1546  ;;  %356 = vst.msk [vmem:[#allocation2 + $0x60] sm:$0xff] %vm231_vm0, %v340_v26  ;;  %v325_v17 = vmul.f32 %v1545_v32, %v1821_v20  ;;  %v919_v43 = vld [vmem:[#allocation2 + $0x10] sm:$0xff] }
  0xe5   : > { %348 = vst.msk [vmem:[#allocation2 + $0x20] sm:$0xff] %vm231_vm0, %v332_v12  ;;  %v317_v0 = vmul.f32 %v1547_v16, %v1824_v21  ;;  %v935_v29 = vmul.f32 %v919_v43, %v1859_v27 }
  0xe6   : > { %v341_v48 = vmul.f32 2.0, %v325_v17  ;;  %363 = vst.msk [vmem:[#allocation3 + $0x10] sm:$0xff] %vm360_vm2, %v1614_v25  ;;  %364 = vst.msk [vmem:[#allocation3 + $0x18] sm:$0xff] %vm360_vm2, %v1614_v25 }
  0xe7   : > { %v1549_v52 = vpop.eup %1548  ;;  %v333_v53 = vmul.f32 2.0, %v317_v0  ;;  %v955_v47 = vsel %vm231_vm0, %v935_v29, 0.0  ;;  %v519_v46 = vld [vmem:[#allocation2 + $0x58] sm:$0xff]  ;;  %365 = vst.msk [vmem:[#allocation3 + $0x20] sm:$0xff] %vm360_vm2, %v1614_v25  ;;  %366 = vst.msk [vmem:[#allocation3 + $0x28] sm:$0xff] %vm360_vm2, %v1614_v25 }
  0xe8   : > { %v1551_v49 = vpop.eup %1550  ;;  %357 = vst.msk [vmem:[#allocation2 + $0x68] sm:$0xff] %vm231_vm0, %v341_v48  ;;  %v326_v20 = vmul.f32 %v1549_v52, %v1833_v30  ;;  %956 = vadd.xlane.f32.xlu0 %v955_v47  ;;  %v920_v50 = vld [vmem:[#allocation2 + $0x18] sm:$0xff]  ;;  %v2019_v56 = vmul.f32 %v519_v46, %v1944_v8  ;;  %v766_v48 = vlaneseq }
  0xe9   : > { %349 = vst.msk [vmem:[#allocation2 + $0x28] sm:$0xff] %vm231_vm0, %v333_v53  ;;  %v318_v21 = vmul.f32 %v1551_v49, %v1836_v31  ;;  %v936_v27 = vmul.f32 %v920_v50, %v1862_v33 }
  0xea   : > { %v342_v58 = vmul.f32 2.0, %v326_v20  ;;  %1444 = vmatpush3.bf16.xpose.msk.msra.mxu0 %vm1872_vm1, %v1439_v3  ;;  %1465 = vmatpush3.bf16.xpose.msk.msra.mxu1 %vm1872_vm1, %v1439_v3  ;;  %367 = vst.msk [vmem:[#allocation3 + $0x30] sm:$0xff] %vm360_vm2, %v1614_v25  ;;  %368 = vst.msk [vmem:[#allocation3 + $0x38] sm:$0xff] %vm360_vm2, %v1614_v25 }
  0xeb   : > { %v1553_v37 = vpop.eup %1552  ;;  %v334_v30 = vmul.f32 2.0, %v318_v21  ;;  %v958_v59 = vsel %vm231_vm0, %v936_v27, 0.0  ;;  %1447 = vmatprep.subr.msk.bf16.mxu0 %vm1872_vm1, %v1445_v6  ;;  %1458 = vmatprep.subr.msk.bf16.mxu1 %vm1872_vm1, %v1445_v6  ;;  %v929_v9 = vld [vmem:[#allocation2 + $0x60] sm:$0xff]  ;;  %369 = vst.msk [vmem:[#allocation3 + $0x40] sm:$0xff] %vm360_vm2, %v1614_v25  ;;  %370 = vst.msk [vmem:[#allocation3 + $0x48] sm:$0xff] %vm360_vm2, %v1614_v25 }
  0xec   : > { %v1555_v31 = vpop.eup %1554  ;;  %358 = vst.msk [vmem:[#allocation2 + $0x70] sm:$0xff] %vm231_vm0, %v342_v58  ;;  %v327_v33 = vmul.f32 %v1553_v37, %v1845_v38  ;;  %959 = vadd.xlane.f32.xlu1 %v958_v59  ;;  %v921_v8 = vld [vmem:[#allocation2 + $0x20] sm:$0xff]  ;;  %v945_v3 = vmul.f32 %v929_v9, %v1976_v57 }
  0xed   : > { %350 = vst.msk [vmem:[#allocation2 + $0x30] sm:$0xff] %vm231_vm0, %v334_v30  ;;  %v319_v36 = vmul.f32 %v1555_v31, %v1848_v39  ;;  %v937_v34 = vmul.f32 %v921_v8, %v1893_v51 }
  0xee   : > { %v343_v60 = vmul.f32 2.0, %v327_v33  ;;  %371 = vst.msk [vmem:[#allocation3 + $0x50] sm:$0xff] %vm360_vm2, %v1614_v25  ;;  %372 = vst.msk [vmem:[#allocation3 + $0x58] sm:$0xff] %vm360_vm2, %v1614_v25 }
  0xef   : > { %v335_v61 = vmul.f32 2.0, %v319_v36  ;;  %v961_v62 = vsel %vm231_vm0, %v937_v34, 0.0  ;;  %v521_v23 = vld [vmem:[#allocation2 + $0x68] sm:$0xff]  ;;  %373 = vst.msk [vmem:[#allocation3 + $0x60] sm:$0xff] %vm360_vm2, %v1614_v25  ;;  %374 = vst.msk [vmem:[#allocation3 + $0x68] sm:$0xff] %vm360_vm2, %v1614_v25 }
  0xf0   : > { %359 = vst.msk [vmem:[#allocation2 + $0x78] sm:$0xff] %vm231_vm0, %v343_v60  ;;  %962 = vadd.xlane.f32.xlu0 %v961_v62  ;;  %v922_v22 = vld [vmem:[#allocation2 + $0x28] sm:$0xff]  ;;  %v2041_v35 = vmul.f32 %v521_v23, %v1967_v55 }
  0xf1   : > { %351 = vst.msk [vmem:[#allocation2 + $0x38] sm:$0xff] %vm231_vm0, %v335_v61  ;;  %v938_v38 = vmul.f32 %v922_v22, %v1896_v54 }
  0xf2   : > { %1450 = vmatpush3.bf16.xpose.msk.msra.mxu0 %vm1872_vm1, %v1445_v6  ;;  %1466 = vmatpush3.bf16.xpose.msk.msra.mxu1 %vm1872_vm1, %v1445_v6  ;;  %375 = vst.msk [vmem:[#allocation3 + $0x70] sm:$0xff] %vm360_vm2, %v1614_v25  ;;  %376 = vst.msk [vmem:[#allocation3 + $0x78] sm:$0xff] %vm360_vm2, %v1614_v25 }
  0xf3   : > { %v964_v39 = vsel %vm231_vm0, %v938_v38, 0.0  ;;  %v931_v19 = vld [vmem:[#allocation2 + $0x70] sm:$0xff]  ;;  %378 = vst.msk [vmem:[#allocation5] sm:$0x1] %vm377_vm4, %v1614_v25 }
  0xf4   : > { %965 = vadd.xlane.f32.xlu1 %v964_v39  ;;  %v923_v51 = vld [vmem:[#allocation2 + $0x30] sm:$0xff]  ;;  %v947_v24 = vmul.f32 %v931_v19, %v2006_v13 }
  0xf5   : > { %v939_v40 = vmul.f32 %v923_v51, %v1911_v10  ;;  %v976_v10 = vsel %vm231_vm0, %v942_v41, 0.0 }
  0xf6   : > { %v991_v28 = vsel %vm231_vm0, %v947_v24, 0.0 }
  0xf7   : > { %v967_v55 = vsel %vm231_vm0, %v939_v40, 0.0  ;;  %v523_v5 = vld [vmem:[#allocation2 + $0x78] sm:$0xff] }
  0xf8   : > { %968 = vadd.xlane.f32.xlu0 %v967_v55  ;;  %v924_v54 = vld [vmem:[#allocation2 + $0x38] sm:$0xff]  ;;  %v2053_v7 = vmul.f32 %v523_v5, %v507_v42 }
  0xf9   : > { %1380 = vmatmul.mubr.msk.f32.vlgmr.msra.gmra.mrb[0].mxu0 %vm231_vm0, %v1955_v2  ;;  %v940_v44 = vmul.f32 %v924_v54, %v1914_v11  ;;  %1392 = vmatmul.mubr.msk.f32.vlgmr.msra.gmra.mrb[0].mxu1 %vm231_vm0, %v926_v63  ;;  %v973_v11 = vsel %vm231_vm0, %v941_v15, 0.0  ;;  %v943_v2 = vmul.f32 %v927_v14, %v1951_v18  ;;  %v985_v18 = vsel %vm231_vm0, %v945_v3, 0.0 }
  0xfa   : > { %1382 = vmatprep.mubr.msk.f32.mxu0 %vm231_vm0, %v919_v43  ;;  %1394 = vmatprep.mubr.msk.f32.mxu1 %vm231_vm0, %v927_v14  ;;  %v994_v24 = vsel %vm231_vm0, %v2053_v7, 0.0 }
  0xfb   : > { %v970_v45 = vsel %vm231_vm0, %v940_v44, 0.0  ;;  %v979_v1 = vsel %vm231_vm0, %v943_v2, 0.0 }
  0xfc   : > { %977 = vadd.xlane.f32.xlu0 %v976_v10  ;;  %971 = vadd.xlane.f32.xlu1 %v970_v45 }
  0xfd   : > { %1383 = vmatmul.mubr.msk.f32.gmra.mrb[2].mxu0 %vm231_vm0, %v920_v50  ;;  %1395 = vmatmul.mubr.msk.f32.gmra.mrb[2].mxu1 %vm231_vm0, %v519_v46  ;;  %v2114_v50 = vand.u32 127, %v766_v48 }
  0xfe   : > { %1385 = vmatprep.mubr.msk.f32.mxu0 %vm231_vm0, %v921_v8  ;;  %1397 = vmatprep.mubr.msk.f32.mxu1 %vm231_vm0, %v929_v9 }
  0xff   : > { %vm770_vm3 = vcmp.lt.s32.totalorder %v2114_v50, 8 }
 0x100   : > { %974 = vadd.xlane.f32.xlu1 %v973_v11  ;;  %v988_v11 = vsel %vm231_vm0, %v2041_v35, 0.0 }
 0x101   : > { %1386 = vmatmul.mubr.msk.f32.gmra.mrb[4].mxu0 %vm231_vm0, %v922_v22  ;;  %1398 = vmatmul.mubr.msk.f32.gmra.mrb[4].mxu1 %vm231_vm0, %v521_v23 }
 0x102   : > { %1388 = vmatprep.mubr.msk.f32.mxu0 %vm231_vm0, %v923_v51  ;;  %1400 = vmatprep.mubr.msk.f32.mxu1 %vm231_vm0, %v931_v19 }
 0x104   : > { %980 = vadd.xlane.f32.xlu1 %v979_v1 }
 0x105   : > { %1389 = vmatmul.mubr.msk.f32.gmra.mrb[6].mxu0 %vm231_vm0, %v924_v54  ;;  %1401 = vmatmul.mubr.msk.f32.gmra.mrb[6].mxu1 %vm231_vm0, %v523_v5  ;;  %v982_v54 = vsel %vm231_vm0, %v2019_v56, 0.0 }
 0x108   : > { %986 = vadd.xlane.f32.xlu1 %v985_v18 }
 0x10c   : > { %992 = vadd.xlane.f32.xlu1 %v991_v28 }
 0x1cc   : > { %v1381_v57 = vpop.f32.mrb[0].mxu0  ;;  %v1393_v4 = vpop.f32.mrb[0].mxu1 }
 0x1cd   : > { %v1296_v26 = vadd.f32 -2.0, %v1381_v57  ;;  %v686_v32 = vpop.f32.mrb[1].mxu0  ;;  %v1304_v12 = vadd.f32 -2.0, %v1393_v4  ;;  %v726_v13 = vpop.f32.mrb[1].mxu1 }
 0x1ce   : > { %v1295_v42 = vadd.f32 -2.0, %v686_v32  ;;  %v1303_v30 = vadd.f32 -2.0, %v726_v13 }
 0x1cf   : > { %v789_v16 = vmul.f32 1.442695, %v1296_v26  ;;  %v805_v17 = vmul.f32 1.442695, %v1304_v12 }
 0x1d0   : > { %v787_v43 = vmul.f32 1.442695, %v1295_v42  ;;  %v1384_v0 = vpop.f32.mrb[2].mxu0  ;;  %v1396_v29 = vpop.f32.mrb[2].mxu1  ;;  %v803_v60 = vmul.f32 1.442695, %v1303_v30 }
 0x1d1   : > { %1556 = vpow2.f32 %v789_v16  ;;  %v1298_v52 = vadd.f32 -2.0, %v1384_v0  ;;  %v696_v53 = vpop.f32.mrb[3].mxu0  ;;  %v1306_v47 = vadd.f32 -2.0, %v1396_v29  ;;  %v736_v6 = vpop.f32.mrb[3].mxu1 }
 0x1d2   : > { %1558 = vpow2.f32 %v787_v43  ;;  %v1297_v61 = vadd.f32 -2.0, %v696_v53  ;;  %v1305_v55 = vadd.f32 -2.0, %v736_v6 }
 0x1d3   : > { %1560 = vpow2.f32 %v805_v17  ;;  %v793_v46 = vmul.f32 1.442695, %v1298_v52  ;;  %v809_v21 = vmul.f32 1.442695, %v1306_v47 }
 0x1d4   : > { %v1387_v49 = vpop.f32.mrb[4].mxu0  ;;  %v1399_v20 = vpop.f32.mrb[4].mxu1  ;;  %v791_v40 = vmul.f32 1.442695, %v1297_v61  ;;  %v807_v10 = vmul.f32 1.442695, %v1305_v55 }
 0x1d5   : > { %1562 = vpow2.f32 %v793_v46  ;;  %v1300_v27 = vadd.f32 -2.0, %v1387_v49  ;;  %v706_v58 = vpop.f32.mrb[5].mxu0  ;;  %v746_v37 = vpop.f32.mrb[5].mxu1  ;;  %v1308_v8 = vadd.f32 -2.0, %v1399_v20  ;;  %v836_v55 = vld [vmem:[#allocation3 + $0x8] sm:$0xff] }
 0x1d6   : > { %1564 = vpow2.f32 %v809_v21  ;;  %v1299_v45 = vadd.f32 -2.0, %v706_v58  ;;  %v1307_v19 = vadd.f32 -2.0, %v746_v37 }
 0x1d7   : > { %v797_v33 = vmul.f32 1.442695, %v1300_v27  ;;  %v813_v51 = vmul.f32 1.442695, %v1308_v8  ;;  %v954_v27 = vpop.xlane.xlu1 %953 }
 0x1d8   : > { %v1390_v59 = vpop.f32.mrb[6].mxu0  ;;  %v1402_v31 = vpop.f32.mrb[6].mxu1  ;;  %v795_v56 = vmul.f32 1.442695, %v1299_v45  ;;  %v811_v35 = vmul.f32 1.442695, %v1307_v19 }
 0x1d9   : > { %v716_v36 = vpop.f32.mrb[7].mxu0  ;;  %v756_v34 = vpop.f32.mrb[7].mxu1  ;;  %1566 = vpow2.f32 %v797_v33  ;;  %v1302_v63 = vadd.f32 -2.0, %v1390_v59  ;;  %v1310_v14 = vadd.f32 -2.0, %v1402_v31  ;;  %v844_v45 = vld [vmem:[#allocation3 + $0x48] sm:$0xff]  ;;  %v838_v19 = vld [vmem:[#allocation3 + $0x18] sm:$0xff] }
 0x1da   : > { %1568 = vpow2.f32 %v803_v60  ;;  %v1301_v28 = vadd.f32 -2.0, %v716_v36  ;;  %v1309_v13 = vadd.f32 -2.0, %v756_v34  ;;  %v951_v59 = vpop.xlane.xlu0 %950 }
 0x1db   : > { %v1557_v62 = vpop.eup %1556  ;;  %1570 = vpow2.f32 %v813_v51  ;;  %v801_v44 = vmul.f32 1.442695, %v1302_v63  ;;  %v817_v2 = vmul.f32 1.442695, %v1310_v14  ;;  %v960_v58 = vpop.xlane.xlu1 %959  ;;  %v997_v8 = vadd.f32 %v954_v27, %v951_v59  ;;  %v842_v27 = vld [vmem:[#allocation3 + $0x38] sm:$0xff] }
 0x1dc   : > { %v1559_v23 = vpop.eup %1558  ;;  %v820_v22 = vsel %vm770_vm3, %v1557_v62, 0.0  ;;  %1572 = vpow2.f32 %v791_v40  ;;  %v799_v12 = vmul.f32 1.442695, %v1301_v28  ;;  %v815_v43 = vmul.f32 1.442695, %v1309_v13  ;;  %v846_v28 = vld [vmem:[#allocation3 + $0x58] sm:$0xff] }
 0x1dd   : > { %v1561_v38 = vpop.eup %1560  ;;  %853 = vadd.xlane.f32.xlu1 %v820_v22  ;;  %v819_v39 = vsel %vm770_vm3, %v1559_v23, 0.0  ;;  %1574 = vpow2.f32 %v801_v44 }
 0x1de   : > { %851 = vadd.xlane.f32.xlu0 %v819_v39  ;;  %v828_v41 = vsel %vm770_vm3, %v1561_v38, 0.0  ;;  %1576 = vpow2.f32 %v807_v10  ;;  %v957_v33 = vpop.xlane.xlu0 %956 }
 0x1df   : > { %v1563_v5 = vpop.eup %1562  ;;  %1578 = vpow2.f32 %v817_v2  ;;  %v966_v37 = vpop.xlane.xlu1 %965  ;;  %v998_v36 = vadd.f32 %v997_v8, %v957_v33 }
 0x1e0   : > { %v822_v15 = vsel %vm770_vm3, %v1563_v5, 0.0  ;;  %v1565_v9 = vpop.eup %1564  ;;  %1580 = vpow2.f32 %v795_v56 }
 0x1e1   : > { %869 = vadd.xlane.f32.xlu1 %v828_v41  ;;  %v830_v1 = vsel %vm770_vm3, %v1565_v9, 0.0  ;;  %1582 = vpow2.f32 %v811_v35  ;;  %v999_v61 = vadd.f32 %v998_v36, %v960_v58  ;;  %v835_v41 = vld [vmem:[#allocation3] sm:$0xff] }
 0x1e2   : > { %983 = vadd.xlane.f32.xlu0 %v982_v54  ;;  %1584 = vpow2.f32 %v799_v12  ;;  %v963_v60 = vpop.xlane.xlu0 %962 }
 0x1e3   : > { %v1567_v3 = vpop.eup %1566  ;;  %1586 = vpow2.f32 %v815_v43  ;;  %v972_v30 = vpop.xlane.xlu1 %971  ;;  %v1000_v62 = vadd.f32 %v999_v61, %v963_v60  ;;  %v850_v61 = vld [vmem:[#allocation3 + $0x78] sm:$0xff] }
 0x1e4   : > { %v1569_v18 = vpop.eup %1568  ;;  %v824_v57 = vsel %vm770_vm3, %v1567_v3, 0.0 }
 0x1e5   : > { %857 = vadd.xlane.f32.xlu1 %v822_v15  ;;  %v1571_v4 = vpop.eup %1570  ;;  %v827_v26 = vsel %vm770_vm3, %v1569_v18, 0.0  ;;  %v1001_v22 = vadd.f32 %v1000_v62, %v966_v37  ;;  %v845_v37 = vld [vmem:[#allocation3 + $0x50] sm:$0xff] }
 0x1e6   : > { %989 = vadd.xlane.f32.xlu0 %v988_v11  ;;  %v1573_v32 = vpop.eup %1572  ;;  %v832_v7 = vsel %vm770_vm3, %v1571_v4, 0.0  ;;  %v969_v23 = vpop.xlane.xlu0 %968 }
 0x1e7   : > { %v1575_v42 = vpop.eup %1574  ;;  %v821_v16 = vsel %vm770_vm3, %v1573_v32, 0.0  ;;  %v975_v31 = vpop.xlane.xlu1 %974  ;;  %v1002_v39 = vadd.f32 %v1001_v22, %v969_v23  ;;  %v839_v23 = vld [vmem:[#allocation3 + $0x20] sm:$0xff] }
 0x1e8   : > { %v1577_v17 = vpop.eup %1576  ;;  %v826_v0 = vsel %vm770_vm3, %v1575_v42, 0.0  ;;  %v843_v42 = vld [vmem:[#allocation3 + $0x40] sm:$0xff] }
 0x1e9   : > { %873 = vadd.xlane.f32.xlu1 %v830_v1  ;;  %v1579_v29 = vpop.eup %1578  ;;  %v829_v48 = vsel %vm770_vm3, %v1577_v17, 0.0  ;;  %v1003_v50 = vadd.f32 %v1002_v39, %v972_v30 }
 0x1ea   : > { %995 = vadd.xlane.f32.xlu0 %v994_v24  ;;  %v1581_v52 = vpop.eup %1580  ;;  %v834_v53 = vsel %vm770_vm3, %v1579_v29, 0.0  ;;  %v978_v40 = vpop.xlane.xlu0 %977 }
 0x1eb   : > { %v823_v47 = vsel %vm770_vm3, %v1581_v52, 0.0  ;;  %v1583_v6 = vpop.eup %1582  ;;  %v981_v34 = vpop.xlane.xlu1 %980  ;;  %v1004_v51 = vadd.f32 %v1003_v50, %v975_v31  ;;  %v848_v52 = vld [vmem:[#allocation3 + $0x68] sm:$0xff]  ;;  %v1018_v31 = vld [vmem:[#allocation5] sm:$0x1] }
 0x1ec   : > { %v831_v46 = vsel %vm770_vm3, %v1583_v6, 0.0  ;;  %v1585_v49 = vpop.eup %1584 }
 0x1ed   : > { %861 = vadd.xlane.f32.xlu1 %v824_v57  ;;  %v825_v20 = vsel %vm770_vm3, %v1585_v49, 0.0  ;;  %v1587_v25 = vpop.eup %1586  ;;  %v1005_v5 = vadd.f32 %v1004_v51, %v978_v40 }
 0x1ee   : > { %867 = vadd.xlane.f32.xlu0 %v827_v26  ;;  %v833_v21 = vsel %vm770_vm3, %v1587_v25, 0.0 }
 0x1ef   : > { %v987_v38 = vpop.xlane.xlu1 %986  ;;  %v1006_v15 = vadd.f32 %v1005_v5, %v981_v34 }
 0x1f1   : > { %877 = vadd.xlane.f32.xlu1 %v832_v7  ;;  %v840_v7 = vld [vmem:[#allocation3 + $0x28] sm:$0xff] }
 0x1f2   : > { %855 = vadd.xlane.f32.xlu0 %v821_v16 }
 0x1f3   : > { %v993_v63 = vpop.xlane.xlu1 %992 }
 0x1f5   : > { %865 = vadd.xlane.f32.xlu1 %v826_v0 }
 0x1f6   : > { %871 = vadd.xlane.f32.xlu0 %v829_v48 }
 0x1f9   : > { %881 = vadd.xlane.f32.xlu1 %v834_v53  ;;  %v837_v53 = vld [vmem:[#allocation3 + $0x10] sm:$0xff] }
 0x1fa   : > { %859 = vadd.xlane.f32.xlu0 %v823_v47 }
 0x1fe   : > { %875 = vadd.xlane.f32.xlu0 %v831_v46 }
 0x202   : > { %863 = vadd.xlane.f32.xlu0 %v825_v20 }
 0x206   : > { %879 = vadd.xlane.f32.xlu0 %v833_v21 }
 0x26a   : > { %v854_v54 = vpop.xlane.xlu1 %853 }
 0x26b   : > { %v884_v44 = vadd.f32 %v854_v54, %v836_v55  ;;  %v852_v14 = vpop.xlane.xlu0 %851  ;;  %v847_v55 = vld [vmem:[#allocation3 + $0x60] sm:$0xff] }
 0x26c   : > { %v883_v10 = vadd.f32 %v852_v14, %v835_v41  ;;  %v841_v14 = vld [vmem:[#allocation3 + $0x30] sm:$0xff] }
 0x26d   : > { %901 = vst.msk [vmem:[#allocation3 + $0x8] sm:$0xff] %vm360_vm2, %v884_v44 }
 0x26e   : > { %900 = vst.msk [vmem:[#allocation3] sm:$0xff] %vm360_vm2, %v883_v10  ;;  %v870_v9 = vpop.xlane.xlu1 %869 }
 0x26f   : > { %v984_v11 = vpop.xlane.xlu0 %983  ;;  %v892_v2 = vadd.f32 %v870_v9, %v844_v45 }
 0x270   : > { %v1007_v56 = vadd.f32 %v1006_v15, %v984_v11 }
 0x271   : > { %909 = vst.msk [vmem:[#allocation3 + $0x48] sm:$0xff] %vm360_vm2, %v892_v2  ;;  %v849_v2 = vld [vmem:[#allocation3 + $0x70] sm:$0xff] }
 0x272   : > { %v1008_v1 = vadd.f32 %v1007_v56, %v987_v38  ;;  %v858_v3 = vpop.xlane.xlu1 %857 }
 0x273   : > { %v990_v18 = vpop.xlane.xlu0 %989  ;;  %v886_v24 = vadd.f32 %v858_v3, %v838_v19 }
 0x274   : > { %v1009_v35 = vadd.f32 %v1008_v1, %v990_v18 }
 0x275   : > { %v1025_v57 = vld [vmem:[#allocation3] sm:$0xff]  ;;  %903 = vst.msk [vmem:[#allocation3 + $0x18] sm:$0xff] %vm360_vm2, %v886_v24 }
 0x276   : > { %v1010_v4 = vadd.f32 %v1009_v35, %v993_v63  ;;  %1588 = vlog2.f32 %v1025_v57  ;;  %v874_v26 = vpop.xlane.xlu1 %873 }
 0x277   : > { %v996_v32 = vpop.xlane.xlu0 %995  ;;  %v894_v12 = vadd.f32 %v874_v26, %v846_v28 }
 0x278   : > { %v1011_v13 = vadd.f32 %v1010_v4, %v996_v32 }
 0x279   : > { %911 = vst.msk [vmem:[#allocation3 + $0x58] sm:$0xff] %vm360_vm2, %v894_v12 }
 0x27a   : > { %v1012_v16 = vrot.slane %v1011_v13, 4  ;;  %v862_v17 = vpop.xlane.xlu1 %861 }
 0x27b   : > { %v868_v43 = vpop.xlane.xlu0 %867  ;;  %v888_v0 = vadd.f32 %v862_v17, %v840_v7 }
 0x27c   : > { %v1013_v29 = vadd.f32 %v1012_v16, %v1011_v13  ;;  %v891_v48 = vadd.f32 %v868_v43, %v843_v42 }
 0x27d   : > { %905 = vst.msk [vmem:[#allocation3 + $0x28] sm:$0xff] %vm360_vm2, %v888_v0 }
 0x27e   : > { %v1014_v47 = vrot.slane %v1013_v29, 2  ;;  %908 = vst.msk [vmem:[#allocation3 + $0x40] sm:$0xff] %vm360_vm2, %v891_v48  ;;  %v878_v6 = vpop.xlane.xlu1 %877 }
 0x27f   : > { %v856_v46 = vpop.xlane.xlu0 %855  ;;  %v896_v49 = vadd.f32 %v878_v6, %v848_v52 }
 0x280   : > { %v1589_v20 = vpop.eup %1588  ;;  %v1015_v25 = vadd.f32 %v1014_v47, %v1013_v29  ;;  %v885_v21 = vadd.f32 %v856_v46, %v837_v53 }
 0x281   : > { %v1042_v58 = vmul.f32 0.6931472, %v1589_v20  ;;  %913 = vst.msk [vmem:[#allocation3 + $0x68] sm:$0xff] %vm360_vm2, %v896_v49 }
 0x282   : > { %v1016_v30 = vrot.slane %v1015_v25, 1  ;;  %902 = vst.msk [vmem:[#allocation3 + $0x10] sm:$0xff] %vm360_vm2, %v885_v21  ;;  %v866_v59 = vpop.xlane.xlu1 %865 }
 0x283   : > { %v1073_v33 = vadd.f32 2.0, %v1042_v58  ;;  %v872_v8 = vpop.xlane.xlu0 %871  ;;  %v890_v36 = vadd.f32 %v866_v59, %v842_v27 }
 0x284   : > { %v1017_v34 = vadd.f32 %v1016_v30, %v1015_v25  ;;  %v893_v60 = vadd.f32 %v872_v8, %v845_v37 }
 0x285   : > { %v1138_v62 = vsel %vm360_vm2, %v1073_v33, 0.0  ;;  %907 = vst.msk [vmem:[#allocation3 + $0x38] sm:$0xff] %vm360_vm2, %v890_v36 }
 0x286   : > { %v1169_v22 = vrot.slane %v1138_v62, 4  ;;  %v1019_v38 = vadd.f32 %v1018_v31, %v1017_v34  ;;  %910 = vst.msk [vmem:[#allocation3 + $0x50] sm:$0xff] %vm360_vm2, %v893_v60  ;;  %v882_v39 = vpop.xlane.xlu1 %881 }
 0x287   : > { %v860_v50 = vpop.xlane.xlu0 %859  ;;  %v898_v51 = vadd.f32 %v882_v39, %v850_v61 }
 0x288   : > { %v1170_v63 = vadd.f32 %v1169_v22, %v1138_v62  ;;  %1021 = vst.msk [vmem:[#allocation5] sm:$0x1] %vm377_vm4, %v1019_v38  ;;  %v887_v40 = vadd.f32 %v860_v50, %v839_v23 }
 0x289   : > { %915 = vst.msk [vmem:[#allocation3 + $0x78] sm:$0xff] %vm360_vm2, %v898_v51 }
 0x28a   : > { %v1171_v41 = vrot.slane %v1170_v63, 2  ;;  %904 = vst.msk [vmem:[#allocation3 + $0x20] sm:$0xff] %vm360_vm2, %v887_v40 }
 0x28b   : > { %v876_v5 = vpop.xlane.xlu0 %875 }
 0x28c   : > { %v1172_v54 = vadd.f32 %v1171_v41, %v1170_v63  ;;  %v895_v44 = vadd.f32 %v876_v5, %v847_v55 }
 0x28e   : > { %v1173_v10 = vrot.slane %v1172_v54, 1  ;;  %912 = vst.msk [vmem:[#allocation3 + $0x60] sm:$0xff] %vm360_vm2, %v895_v44 }
 0x28f   : > { %v864_v45 = vpop.xlane.xlu0 %863  ;;  %v1175_v11 = vld [vmem:[#allocation5] sm:$0x1] }
 0x290   : > { %v1174_v15 = vadd.f32 %v1173_v10, %v1172_v54  ;;  %v889_v9 = vadd.f32 %v864_v45, %v841_v14 }
 0x292   : > { %v1176_v56 = vsub.f32 %v1174_v15, %v1175_v11  ;;  %906 = vst.msk [vmem:[#allocation3 + $0x30] sm:$0xff] %vm360_vm2, %v889_v9 }
 0x293   : > { %v880_v19 = vpop.xlane.xlu0 %879 }
 0x294   : > { %v1177_v1 = vmul.f32 0.0625, %v1176_v56  ;;  %v897_v3 = vadd.f32 %v880_v19, %v849_v2 }
 0x296   : > { %1178 = vst.msk [vmem:[%s194_s24] sm:$0x1] %vm377_vm4, %v1177_v1 }
 0x297   : > { %914 = vst.msk [vmem:[#allocation3 + $0x70] sm:$0xff] %vm360_vm2, %v897_v3 }
 0x298 PF: > { %s12_s11 = sadd.s32 1, %s1612_s11   ;;  %s2194_s9 = smov %s1608_s10 }
 0x299   : > { %p9_p6 = scmp.ge.s32.totalorder %s12_s11, 4   ;;  %s2195_s10 = smov %s2197_s12 }
 0x29b   :  { %11 = sbr.rel (!%p9_p6) target bundleno = 2 (0x2), region = 70 }

</bundles_post_ra>
